<compile_context>
chip_gen: v6e
topology: v6e:2x2x1
jax: 0.10.0
libtpu: 0.0.40
codegen_flags: <defaults>
</compile_context>

<pallas_src>
import functools

import jax
import jax.numpy as jnp
from jax.experimental import pallas as pl
from jax.experimental.pallas import tpu as pltpu


def gfunction_kernel(x_ref, w1_ref, b1_ref, w2_ref, b2_ref, w3_ref, b3_ref, o_ref):
    # Weights arrive as bf16 (cast once in the wrapper). Activations are cast
    # to bf16 right before each dot so every matmul is a single-pass MXU op;
    # accumulation and the bias+ReLU epilogue stay in f32.
    x = x_ref[...].astype(jnp.bfloat16)
    # fc1 + ReLU
    h1 = jnp.dot(x, w1_ref[...], preferred_element_type=jnp.float32)
    h1 = jnp.maximum(h1 + b1_ref[...], 0.0)
    # fc2 + ReLU
    h2 = jnp.dot(h1.astype(jnp.bfloat16), w2_ref[...], preferred_element_type=jnp.float32)
    h2 = jnp.maximum(h2 + b2_ref[...], 0.0)
    # last (no activation)
    out = jnp.dot(h2.astype(jnp.bfloat16), w3_ref[...], preferred_element_type=jnp.float32)
    o_ref[...] = (out + b3_ref[...]).astype(o_ref.dtype)


def _round_up(n, m):
    return ((n + m - 1) // m) * m


@functools.partial(jax.jit, static_argnames=("tile_b",))
def gfunction_forward(x, params, tile_b=4096):
    """x: (B, obs_size) f32. params: dict of w1,b1,w2,b2,w3,b3 in (in,out)-layout."""
    # Cast weights to bf16 once (outside the kernel); biases stay f32.
    w1 = params["w1"].astype(jnp.bfloat16)
    w2 = params["w2"].astype(jnp.bfloat16)
    w3 = params["w3"].astype(jnp.bfloat16)
    b1, b2, b3 = params["b1"], params["b2"], params["b3"]

    B, obs = x.shape
    h1_dim = w1.shape[1]
    h2_dim = w2.shape[1]
    num_outputs = w3.shape[1]

    # Validate/round the requested tile to the sublane quantum in every branch.
    tile_b = max(8, _round_up(int(tile_b), 8))

    if B <= 16:
        # Tiny batch: one step is all we can do.
        TB = _round_up(B, 8)
    elif B <= tile_b:
        # Fits a single tile, but split into >=2 grid steps so both v7x
        # TensorCores get work (no-op cost on v5e/v6e's single TC).
        TB = _round_up(pl.cdiv(B, 2), 8)
    else:
        TB = tile_b

    # Partial last block is handled by Pallas (OOB output writes are dropped),
    # so no host-side pad of x or slice of the output is needed.
    grid = (pl.cdiv(B, TB),)

    # Activations stream per grid step; weights/biases are resident (constant maps).
    x_spec = pl.BlockSpec((TB, obs), lambda i: (i, 0))
    out_spec = pl.BlockSpec((TB, num_outputs), lambda i: (i, 0))

    def const_spec(arr):
        return pl.BlockSpec(arr.shape, lambda i: (0, 0))

    flops = 2 * B * (obs * h1_dim + h1_dim * h2_dim + h2_dim * num_outputs)
    bytes_accessed = (
        x.size * x.dtype.itemsize
        + sum(int(p.size) * p.dtype.itemsize for p in (w1, b1, w2, b2, w3, b3))
        + B * num_outputs * 4
    )

    return pl.pallas_call(
        gfunction_kernel,
        out_shape=jax.ShapeDtypeStruct((B, num_outputs), jnp.float32),
        grid=grid,
        in_specs=[
            x_spec,
            const_spec(w1),
            const_spec(b1),
            const_spec(w2),
            const_spec(b2),
            const_spec(w3),
            const_spec(b3),
        ],
        out_specs=out_spec,
        compiler_params=pltpu.CompilerParams(
            dimension_semantics=("parallel",),
            vmem_limit_bytes=48 * 1024 * 1024,
        ),
        cost_estimate=pl.CostEstimate(
            flops=flops, transcendentals=0, bytes_accessed=bytes_accessed
        ),
    )(x, w1, b1, w2, b2, w3, b3)


def init_params(key, obs_size, num_outputs=128):
    """Deterministic synthetic init (uniform, PyTorch-Linear-like scale)."""
    ks = jax.random.split(key, 6)

    def lin(kw, kb, fan_in, fan_out):
        bound = 1.0 / jnp.sqrt(jnp.float32(fan_in))
        w = jax.random.uniform(kw, (fan_in, fan_out), jnp.float32, -bound, bound)
        b = jax.random.uniform(kb, (1, fan_out), jnp.float32, -bound, bound)
        return w, b

    w1, b1 = lin(ks[0], ks[1], obs_size, 32)
    w2, b2 = lin(ks[2], ks[3], 32, 32)
    w3, b3 = lin(ks[4], ks[5], 32, num_outputs)
    return {"w1": w1, "b1": b1, "w2": w2, "b2": b2, "w3": w3, "b3": b3}


def _reference_matched(x, params):
    """Pure-JAX reference with the kernel's exact math (bf16 operands, f32 accumulate)."""
    w1 = params["w1"].astype(jnp.bfloat16)
    w2 = params["w2"].astype(jnp.bfloat16)
    w3 = params["w3"].astype(jnp.bfloat16)
    h1 = jnp.maximum(
        jnp.dot(x.astype(jnp.bfloat16), w1, preferred_element_type=jnp.float32)
        + params["b1"], 0.0)
    h2 = jnp.maximum(
        jnp.dot(h1.astype(jnp.bfloat16), w2, preferred_element_type=jnp.float32)
        + params["b2"], 0.0)
    return (jnp.dot(h2.astype(jnp.bfloat16), w3, preferred_element_type=jnp.float32)
            + params["b3"])


def _reference_f32(x, params):
    h1 = jnp.maximum(x @ params["w1"] + params["b1"], 0.0)
    h2 = jnp.maximum(h1 @ params["w2"] + params["b2"], 0.0)
    return h2 @ params["w3"] + params["b3"]


if __name__ == "__main__":
    key = jax.random.PRNGKey(0)
    k_x, k_x2, k_x3, k_p = jax.random.split(key, 4)

    obs_size = 16
    num_outputs = 128
    params = init_params(k_p, obs_size, num_outputs)

    # Small case (matches the module's typical usage).
    x = jax.random.normal(k_x, (8, obs_size), jnp.float32)
    out = jax.block_until_ready(gfunction_forward(x, params))
    assert out.shape == (8, num_outputs)
    assert jnp.allclose(out, _reference_matched(x, params), atol=1e-4, rtol=1e-4)
    assert jnp.allclose(out, _reference_f32(x, params), atol=5e-2, rtol=5e-2)

    # Ragged batch + explicit multi-step grid: exercises the partial last tile
    # path (no host-side pad/slice) and tile_b rounding.
    x2 = jax.random.normal(k_x2, (520, obs_size), jnp.float32)
    out2 = jax.block_until_ready(gfunction_forward(x2, params, tile_b=256))
    assert out2.shape == (520, num_outputs)
    assert jnp.allclose(out2, _reference_matched(x2, params), atol=1e-4, rtol=1e-4)

    # Medium batch on the default tile: split into >=2 grid steps (v7x megacore path).
    x3 = jax.random.normal(k_x3, (300, obs_size), jnp.float32)
    out3 = jax.block_until_ready(gfunction_forward(x3, params))
    assert out3.shape == (300, num_outputs)
    assert jnp.allclose(out3, _reference_matched(x3, params), atol=1e-4, rtol=1e-4)

    print("KERNEL_OK")
</pallas_src>

<mosaic_0001>
module attributes {stable_mosaic.version = 11 : i64} {
  func.func @gfunction_kernel(%arg0: i32, %arg1: memref<8x16xf32, #tpu.memory_space<vmem>>, %arg2: memref<16x32xbf16, #tpu.memory_space<vmem>>, %arg3: memref<1x32xf32, #tpu.memory_space<vmem>>, %arg4: memref<32x32xbf16, #tpu.memory_space<vmem>>, %arg5: memref<1x32xf32, #tpu.memory_space<vmem>>, %arg6: memref<32x128xbf16, #tpu.memory_space<vmem>>, %arg7: memref<1x128xf32, #tpu.memory_space<vmem>>, %arg8: memref<8x128xf32, #tpu.memory_space<vmem>>) attributes {dimension_semantics = [#tpu.dimension_semantics<parallel>], iteration_bounds = array<i64: 1>, scalar_prefetch = 0 : i64, scratch_operands = 0 : i64, tpu.core_type = #tpu.core_type<tc>, window_params = [{transform_indices = @transform_0, window_bounds = array<i64: 8, 16>}, {pipeline_mode = #tpu.pipeline_mode<synchronous>, transform_indices = @transform_1, window_bounds = array<i64: 16, 32>}, {pipeline_mode = #tpu.pipeline_mode<synchronous>, transform_indices = @transform_2, window_bounds = array<i64: 1, 32>}, {pipeline_mode = #tpu.pipeline_mode<synchronous>, transform_indices = @transform_3, window_bounds = array<i64: 32, 32>}, {pipeline_mode = #tpu.pipeline_mode<synchronous>, transform_indices = @transform_4, window_bounds = array<i64: 1, 32>}, {pipeline_mode = #tpu.pipeline_mode<synchronous>, transform_indices = @transform_5, window_bounds = array<i64: 32, 128>}, {pipeline_mode = #tpu.pipeline_mode<synchronous>, transform_indices = @transform_6, window_bounds = array<i64: 1, 128>}, {transform_indices = @transform_7, window_bounds = array<i64: 8, 128>}]} {
    %c0 = arith.constant 0 : index
    %c0_0 = arith.constant 0 : index
    %0 = vector.load %arg1[%c0, %c0_0] : memref<8x16xf32, #tpu.memory_space<vmem>>, vector<8x16xf32>
    %1 = arith.truncf %0 : vector<8x16xf32> to vector<8x16xbf16>
    %c0_1 = arith.constant 0 : index
    %c0_2 = arith.constant 0 : index
    %2 = vector.load %arg2[%c0_1, %c0_2] : memref<16x32xbf16, #tpu.memory_space<vmem>>, vector<16x32xbf16>
    %cst = arith.constant dense<0.000000e+00> : vector<8x32xf32>
    %3 = tpu.matmul %1, %2, %cst {dimension_numbers = #tpu.dot_dimension_numbers<[1], [0], [0], [1], [0, 0, 1, 1], [], []>} : vector<8x16xbf16>, vector<16x32xbf16>, vector<8x32xf32> -> vector<8x32xf32>
    %c0_3 = arith.constant 0 : index
    %c0_4 = arith.constant 0 : index
    %4 = vector.load %arg3[%c0_3, %c0_4] : memref<1x32xf32, #tpu.memory_space<vmem>>, vector<1x32xf32>
    %5 = vector.broadcast %4 : vector<1x32xf32> to vector<8x32xf32>
    %6 = arith.addf %3, %5 : vector<8x32xf32>
    %cst_5 = arith.constant 0.000000e+00 : f32
    %7 = vector.broadcast %cst_5 : f32 to vector<8x32xf32>
    %8 = arith.maximumf %6, %7 : vector<8x32xf32>
    %9 = arith.truncf %8 : vector<8x32xf32> to vector<8x32xbf16>
    %c0_6 = arith.constant 0 : index
    %c0_7 = arith.constant 0 : index
    %10 = vector.load %arg4[%c0_6, %c0_7] : memref<32x32xbf16, #tpu.memory_space<vmem>>, vector<32x32xbf16>
    %cst_8 = arith.constant dense<0.000000e+00> : vector<8x32xf32>
    %11 = tpu.matmul %9, %10, %cst_8 {dimension_numbers = #tpu.dot_dimension_numbers<[1], [0], [0], [1], [0, 0, 1, 1], [], []>} : vector<8x32xbf16>, vector<32x32xbf16>, vector<8x32xf32> -> vector<8x32xf32>
    %c0_9 = arith.constant 0 : index
    %c0_10 = arith.constant 0 : index
    %12 = vector.load %arg5[%c0_9, %c0_10] : memref<1x32xf32, #tpu.memory_space<vmem>>, vector<1x32xf32>
    %13 = vector.broadcast %12 : vector<1x32xf32> to vector<8x32xf32>
    %14 = arith.addf %11, %13 : vector<8x32xf32>
    %cst_11 = arith.constant 0.000000e+00 : f32
    %15 = vector.broadcast %cst_11 : f32 to vector<8x32xf32>
    %16 = arith.maximumf %14, %15 : vector<8x32xf32>
    %17 = arith.truncf %16 : vector<8x32xf32> to vector<8x32xbf16>
    %c0_12 = arith.constant 0 : index
    %c0_13 = arith.constant 0 : index
    %18 = vector.load %arg6[%c0_12, %c0_13] : memref<32x128xbf16, #tpu.memory_space<vmem>>, vector<32x128xbf16>
    %cst_14 = arith.constant dense<0.000000e+00> : vector<8x128xf32>
    %19 = tpu.matmul %17, %18, %cst_14 {dimension_numbers = #tpu.dot_dimension_numbers<[1], [0], [0], [1], [0, 0, 1, 1], [], []>} : vector<8x32xbf16>, vector<32x128xbf16>, vector<8x128xf32> -> vector<8x128xf32>
    %c0_15 = arith.constant 0 : index
    %c0_16 = arith.constant 0 : index
    %20 = vector.load %arg7[%c0_15, %c0_16] : memref<1x128xf32, #tpu.memory_space<vmem>>, vector<1x128xf32>
    %21 = vector.broadcast %20 : vector<1x128xf32> to vector<8x128xf32>
    %22 = arith.addf %19, %21 : vector<8x128xf32>
    %c0_17 = arith.constant 0 : index
    %c0_18 = arith.constant 0 : index
    %23 = vector.load %arg8[%c0_17, %c0_18] : memref<8x128xf32, #tpu.memory_space<vmem>>, vector<8x128xf32>
    tpu.vector_store %arg8[%c0_17, %c0_18], %22 {strides = array<i32>} : memref<8x128xf32, #tpu.memory_space<vmem>>, vector<8x128xf32>,
    return
  }
  func.func @transform_0(%arg0: i32) -> (i32, i32) {
    %c0_i32 = arith.constant 0 : i32
    %c0_i32_0 = arith.constant 0 : i32
    return %arg0, %c0_i32 : i32, i32
  }
  func.func @transform_1(%arg0: i32) -> (i32, i32) {
    %c0_i32 = arith.constant 0 : i32
    %c0_i32_0 = arith.constant 0 : i32
    %c0_i32_1 = arith.constant 0 : i32
    return %c0_i32, %c0_i32_0 : i32, i32
  }
  func.func @transform_2(%arg0: i32) -> (i32, i32) {
    %c0_i32 = arith.constant 0 : i32
    %c0_i32_0 = arith.constant 0 : i32
    %c0_i32_1 = arith.constant 0 : i32
    return %c0_i32, %c0_i32_0 : i32, i32
  }
  func.func @transform_3(%arg0: i32) -> (i32, i32) {
    %c0_i32 = arith.constant 0 : i32
    %c0_i32_0 = arith.constant 0 : i32
    %c0_i32_1 = arith.constant 0 : i32
    return %c0_i32, %c0_i32_0 : i32, i32
  }
  func.func @transform_4(%arg0: i32) -> (i32, i32) {
    %c0_i32 = arith.constant 0 : i32
    %c0_i32_0 = arith.constant 0 : i32
    %c0_i32_1 = arith.constant 0 : i32
    return %c0_i32, %c0_i32_0 : i32, i32
  }
  func.func @transform_5(%arg0: i32) -> (i32, i32) {
    %c0_i32 = arith.constant 0 : i32
    %c0_i32_0 = arith.constant 0 : i32
    %c0_i32_1 = arith.constant 0 : i32
    return %c0_i32, %c0_i32_0 : i32, i32
  }
  func.func @transform_6(%arg0: i32) -> (i32, i32) {
    %c0_i32 = arith.constant 0 : i32
    %c0_i32_0 = arith.constant 0 : i32
    %c0_i32_1 = arith.constant 0 : i32
    return %c0_i32, %c0_i32_0 : i32, i32
  }
  func.func @transform_7(%arg0: i32) -> (i32, i32) {
    %c0_i32 = arith.constant 0 : i32
    %c0_i32_0 = arith.constant 0 : i32
    return %arg0, %c0_i32 : i32, i32
  }
}

</mosaic_0001>

<bundles_post_ra>
// kernel: gfunction_forward.1
= control target key start
LH: loop header
LB: loop body
LE: loop exit
PB: predicated region body
PF: predicated region fallthrough
CT: control target
= control target key end

     0   :  { %v312_v1 = vmov 0.0   ;;  %vm45_vm0 = vcmask 130048   ;;  %vm313_vm1 = vmmov 0   ;;  %s385_s0 = inlined_call_operand.vmem [shape: f32[8,16], index: 0, kind: input, shape index: {}]   ;;  %s386_s1 = inlined_call_operand.vmem [shape: bf16[16,32], index: 1, kind: input, shape index: {}]   ;;  %s387_s2 = inlined_call_operand.vmem [shape: f32[1,32], index: 2, kind: input, shape index: {}]   ;;  %s388_s3 = inlined_call_operand.vmem [shape: bf16[32,32], index: 3, kind: input, shape index: {}]   ;;  %s389_s4 = inlined_call_operand.vmem [shape: f32[1,32], index: 4, kind: input, shape index: {}]   ;;  %s390_s5 = inlined_call_operand.vmem [shape: bf16[32,128], index: 5, kind: input, shape index: {}]   ;;  %s391_s6 = inlined_call_operand.vmem [shape: f32[1,128], index: 6, kind: input, shape index: {}]   ;;  %s392_s7 = inlined_call_operand.hbm [shape: f32[8,128], index: 7, kind: output, shape index: {}]  }
   0x1   :  { %v285_v0 = vld [vmem:[%s386_s1] sm:$0xff]   ;;  %260 = vmatprep.subr.bf16.mxu0 %v312_v1  ;;  %266 = vmatprep.subr.bf16.mxu1 %v312_v1 }
   0x2   :  { %v28_v2 = vld [vmem:[%s385_s0] sm:$0xff]  ;;  %261 = vmatpush3.bf16.msra.mxu0 %v285_v0  ;;  %262 = vmatprep.mubr.msk.bf16.mxu0 %vm313_vm1, %v312_v1 }
   0x3   :  { %v29_v3 = vpack.c.bf16 %v28_v2, %v28_v2  ;;  %270 = vmatprep.mubr.msk.bf16.mxu1 %vm313_vm1, %v312_v1  ;;  %274 = vmatprep.subr.bf16.mxu0 %v312_v1 }
   0x4   :  { %12 = vsyncpa [#allocation3], 0  ;;  %v286_v4 = vld [vmem:[%s388_s3 + $0x8] sm:$0xff]   ;;  %v287_v5 = vld [vmem:[%s388_s3] sm:$0xff]   ;;  %vm114_vm2 = vcmask 261120   ;;  %s314_s15 = smov [#allocation2]  }
   0x5   :  { %263 = vmatmul.mubr.msk.bf16.vlgmr.msra.gmra.mxu0 %vm45_vm0, %v29_v3  ;;  %267 = vmatpush3.bf16.msra.mxu1 %v286_v4  ;;  %v288_v6 = vld [vmem:[%s390_s5 + $0x8] sm:$0xff]   ;;  %v241_v7 = vld [vmem:[%s387_s2] ss:$0 sm:$0xff]  ;;  %s233_s16 = sshll.u32 %s314_s15, 4  ;;  %s234_s16 = int_to_ptr.vmem [resolvable:$true] %s233_s16 }
   0x6   :  { %278 = vmatprep.mubr.msk.bf16.mxu0 %vm313_vm1, %v312_v1  ;;  %268 = vmatprep.subr.bf16.mxu1 %v312_v1  ;;  %v289_v15 = vld [vmem:[%s390_s5] sm:$0xff]   ;;  %p295_p1 = scmp.lt.s32.totalorder %s234_s16, %s234_s16 }
   0x7   :  { %275 = vmatpush3.bf16.msra.mxu0 %v288_v6  ;;  %v244_v16 = vld [vmem:[%s389_s4] ss:$0 sm:$0xff]  ;;  %s290_s4 = scalar_lea.vmem %s234_s16, 128 }
   0x8   :  { %276 = vmatprep.subr.bf16.mxu0 %v312_v1  ;;  %v248_v24 = vld [vmem:[%s391_s6] ss:$0 sm:$0xff]  ;;  %p291_p0 = scmp.ne.s32.totalorder %s234_s16, %s290_s4  ;;  %p296_p2 = scmp.lt.s32.totalorder %s290_s4, %s290_s4 }
   0x9   :  { %269 = vmatpush3.bf16.msra.mxu1 %v287_v5 }
   0xa   :  { %p297_p3 = por %p296_p2, %p295_p1 }
   0xb   :  { %277 = vmatpush3.bf16.msra.mxu0 %v289_v15 }
   0xc   :  { %p298_p4 = pnand %p297_p3, %p291_p0 }
  0xc5   :  { %v83_v8 = vpop.f32.mrf.mxu0 }
  0xc6   :  { %v84_v9 = vadd.f32 %v241_v7, %v83_v8 }
  0xc7   :  { %v264_v10 = vpop.f32.mrf.mxu0 }
  0xc8   :  { %v89_v11 = vmax.f32 %v84_v9, 0.0 }
  0xc9   :  { %v86_v12 = vpop.f32.mrf.mxu0 }
  0xca   :  { %v90_v13 = vpack.c.bf16 %v89_v11, %v89_v11 }
  0xcb   :  { %v265_v14 = vpop.f32.mrf.mxu0 }
  0xcc   :  { %271 = vmatmul.mubr.msk.bf16.vlgmr.msra.gmra.mxu1 %vm114_vm2, %v90_v13 }
 0x18c   :  { %v152_v17 = vpop.f32.mrf.mxu1 }
 0x18d   :  { %v153_v18 = vadd.f32 %v244_v16, %v152_v17 }
 0x18e   :  { %v272_v19 = vpop.f32.mrf.mxu1 }
 0x18f   :  { %v158_v20 = vmax.f32 %v153_v18, 0.0 }
 0x190   :  { %v155_v21 = vpop.f32.mrf.mxu1 }
 0x191   :  { %v159_v22 = vpack.c.bf16 %v158_v20, %v158_v20 }
 0x192   :  { %v273_v23 = vpop.f32.mrf.mxu1 }
 0x193   :  { %279 = vmatmul.mubr.msk.bf16.vlgmr.msra.gmra.mxu0 %vm114_vm2, %v159_v22 }
 0x253   :  { %v220_v25 = vpop.f32.mrf.mxu0 }
 0x254   :  { %v221_v26 = vadd.f32 %v248_v24, %v220_v25 }
 0x255   :  { %v280_v27 = vpop.f32.mrf.mxu0 }
 0x256   :  { %226 = vst [vmem:[#allocation2] sm:$0xff] %v221_v26 }
 0x257   :  { %v223_v28 = vpop.f32.mrf.mxu0 }
 0x258   :  { %301 = shalt.err (!%p298_p4)
}
 0x259   :  { %236 = dma.vmem_to_hbm [thread:$0]  %s234_s16, 128, %s392_s7, [#allocation3]   ;;  %v281_v29 = vpop.f32.mrf.mxu0 }
 0x25a   :  { %310 = dma.done.wait [#allocation3], 128  }
 0x25b   :  { %311 = vsyncadd [#allocation3], 4294967168 }
 0x25c   :  { %240 = vsyncpa [#allocation3], 1 }

</bundles_post_ra>
